<compile_context>
chip_gen: v7x
topology: tpu7x:2x2x1
jax: 0.10.0
libtpu: 0.0.40
codegen_flags: <defaults>
</compile_context>

<pallas_src>
import functools

import jax
import jax.numpy as jnp
from jax import lax
from jax.experimental import pallas as pl
from jax.experimental.pallas import tpu as pltpu


def _round_up(x, m):
    return ((x + m - 1) // m) * m


def _tpu_config():
    """Per-generation tuning knobs (perf only; numerics-safe defaults)."""
    try:
        kind = jax.devices()[0].device_kind.lower()
    except Exception:  # pragma: no cover - defensive
        kind = ""
    is_v5 = "v5" in kind
    is_v7 = "v7" in kind or "tpu7" in kind
    logit_dtype = jnp.float32 if is_v5 else jnp.bfloat16   # no bf16 VPU/EUP on v5
    tile_m = 128 if is_v7 else 256
    pad_to = tile_m * (2 if is_v7 else 1)  # even tile count keeps both v7x TCs busy
    vmem_limit = (40 if is_v7 else 64) * 1024 * 1024
    return logit_dtype, tile_m, pad_to, vmem_limit


# ---------------------------------------------------------------------------
# Kernel 1: fused projection  y = x @ [W | W@a_src | W@a_dst], multi-output.
# ---------------------------------------------------------------------------
def _proj_kernel(x_ref, w_ref, h_ref, asrc_ref, adst_ref, *, hf, heads):
    # x_ref   : [TILE_M, F_in]    bf16
    # w_ref   : [F_in, HF + 2H]   bf16  (attention-logit matmuls folded in)
    # h_ref   : [TILE_M, HF]      bf16  projected features
    # asrc_ref/adst_ref : [TILE_M, H]   logit-dtype attention halves
    y = jnp.dot(x_ref[...], w_ref[...], preferred_element_type=jnp.float32)
    h_ref[...] = y[:, :hf].astype(h_ref.dtype)
    asrc_ref[...] = y[:, hf:hf + heads].astype(asrc_ref.dtype)
    adst_ref[...] = y[:, hf + heads:hf + 2 * heads].astype(adst_ref.dtype)


# ---------------------------------------------------------------------------
# Kernel 2: masked multi-head attention softmax + aggregation (row-tiled).
# ---------------------------------------------------------------------------
def _attn_kernel(adst_ref, asrct_ref, ht_ref, adj_ref, bias_ref,
                 out_ref, acc_ref, *, heads, f_out, hf, apply_relu):
    # adst_ref : [TILE_M, H]   a_dst for this destination-row tile
    # asrct_ref: [H, N]        a_src transposed (all source nodes)
    # ht_ref   : [HF, N] bf16  projected features, transposed (lane-dense)
    # adj_ref  : [TILE_M, N]   int8 adj[dst, src] (self-loops included)
    # bias_ref : [1, HF_pad]   f32
    # out_ref  : [TILE_M, HF_pad] f32
    # acc_ref  : VMEM scratch [TILE_M, HF_pad] f32
    ldt = adst_ref.dtype                 # bf16 on v6e/v7x, f32 on v5e
    hf_pad = out_ref.shape[-1]

    # Mask bias hoisted out of the head loop, computed straight from int8.
    mask_bias = jnp.where(adj_ref[...] > 0,
                          jnp.asarray(0.0, ldt), jnp.asarray(-1e30, ldt))
    a_dst = adst_ref[...]                                  # [TILE_M, H]
    a_srct = asrct_ref[...]                                # [H, N]
    slope = jnp.asarray(0.2, ldt)

    # Head loop overwrites lanes [0, hf); only the padding lanes (sliced off
    # after the call) need a deterministic fill.
    if hf < hf_pad:
        acc_ref[:, hf:] = jnp.zeros((acc_ref.shape[0], hf_pad - hf),
                                    jnp.float32)

    for hd in range(heads):
        # e[i, j] = a_dst[i, hd] + a_src[j, hd]   (LeakyReLU(0.2), masked)
        e = a_dst[:, hd:hd + 1] + a_srct[hd:hd + 1, :]     # [TILE_M, N]
        e = jnp.maximum(e, slope * e)
        e = e + mask_bias
        m = jnp.max(e, axis=-1, keepdims=True)
        p = jnp.exp(e - m)            # masked entries underflow to exactly 0
        # Denominator accumulated in f32 regardless of the logit dtype.
        denom = jnp.sum(p, axis=-1, keepdims=True, dtype=jnp.float32)
        inv = pl.reciprocal(denom, approx=True)            # EUP slot (free)
        # MXU aggregation against the head's contiguous sublane slice of h_t,
        # contracting the source-node axis; normalise AFTER aggregation.
        v = lax.dot_general(
            p.astype(jnp.bfloat16),
            ht_ref[hd * f_out:(hd + 1) * f_out, :],
            (((1,), (1,)), ((), ())),
            preferred_element_type=jnp.float32)            # [TILE_M, F_out]
        acc_ref[:, hd * f_out:(hd + 1) * f_out] = v * inv

    out = acc_ref[...] + bias_ref[...]
    if apply_relu:
        out = jnp.maximum(out, 0.0)
    out_ref[...] = out.astype(out_ref.dtype)               # single dense store


# ---------------------------------------------------------------------------
# One GATConv layer (concat=True) = projection call + attention call.
# ---------------------------------------------------------------------------
def gat_layer(x, W, att_src, att_dst, bias, adj_i8, *, heads, f_out,
              apply_relu, tile_m, logit_dtype, vmem_limit):
    n_pad, f_in = x.shape
    assert n_pad % tile_m == 0 and n_pad % 128 == 0
    hf = heads * f_out
    hf_pad = _round_up(hf, 128)

    # Fold the attention-logit matmuls into the projection weights (in f32),
    # then cast once to bf16 for the MXU.
    w3 = W.reshape(f_in, heads, f_out)
    w_src = jnp.einsum("ihf,hf->ih", w3, att_src)          # [f_in, H]
    w_dst = jnp.einsum("ihf,hf->ih", w3, att_dst)          # [f_in, H]
    w_aug = jnp.concatenate([W, w_src, w_dst], axis=1).astype(jnp.bfloat16)
    wcols = hf + 2 * heads
    x_bf = x.astype(jnp.bfloat16)

    grid = (n_pad // tile_m,)
    cparams = pltpu.CompilerParams(
        dimension_semantics=("parallel",),
        vmem_limit_bytes=vmem_limit)

    # ---- stage 1: fused projection (bf16 operands, multi-output, no pad).
    h, a_src, a_dst = pl.pallas_call(
        functools.partial(_proj_kernel, hf=hf, heads=heads),
        out_shape=(jax.ShapeDtypeStruct((n_pad, hf), jnp.bfloat16),
                   jax.ShapeDtypeStruct((n_pad, heads), logit_dtype),
                   jax.ShapeDtypeStruct((n_pad, heads), logit_dtype)),
        grid=grid,
        in_specs=[pl.BlockSpec((tile_m, f_in), lambda i: (i, 0)),
                  pl.BlockSpec((f_in, wcols), lambda i: (0, 0))],
        out_specs=(pl.BlockSpec((tile_m, hf), lambda i: (i, 0)),
                   pl.BlockSpec((tile_m, heads), lambda i: (i, 0)),
                   pl.BlockSpec((tile_m, heads), lambda i: (i, 0))),
        compiler_params=cparams,
    )(x_bf, w_aug)

    # Tiny XLA glue: transpose h / a_src to lane-dense [*, N] layouts
    # (O(N*HF) bf16 — negligible next to the O(N^2) attention stage).
    h_t = h.T                                              # [HF, N] bf16
    a_srct = a_src.T                                       # [H, N]
    bias_p = jnp.pad(bias, (0, hf_pad - hf)).reshape(1, hf_pad)

    kern = functools.partial(_attn_kernel, heads=heads, f_out=f_out, hf=hf,
                             apply_relu=apply_relu)

    # ---- stage 2: attention, tiled over destination-node rows.
    out = pl.pallas_call(
        kern,
        out_shape=jax.ShapeDtypeStruct((n_pad, hf_pad), jnp.float32),
        grid=grid,
        in_specs=[
            pl.BlockSpec((tile_m, heads), lambda i: (i, 0)),    # a_dst tile
            pl.BlockSpec((heads, n_pad), lambda i: (0, 0)),     # a_src^T
            pl.BlockSpec((hf, n_pad), lambda i: (0, 0)),        # h^T (bf16)
            pl.BlockSpec((tile_m, n_pad), lambda i: (i, 0)),    # adj (int8)
            pl.BlockSpec((1, hf_pad), lambda i: (0, 0)),        # bias
        ],
        out_specs=pl.BlockSpec((tile_m, hf_pad), lambda i: (i, 0)),
        scratch_shapes=[pltpu.VMEM((tile_m, hf_pad), jnp.float32)],
        compiler_params=cparams,
    )(a_dst, a_srct, h_t, adj_i8, bias_p)
    return out[:, :hf]


# ---------------------------------------------------------------------------
# GAT_NET forward: gat1 -> relu -> dropout(eval) -> gat2
# ---------------------------------------------------------------------------
def gat_net_forward(x, edge_index, params, *, hidden, classes, heads):
    n, f_in = x.shape
    logit_dtype, tile_m, pad_to, vmem_limit = _tpu_config()
    n_pad = _round_up(n, pad_to)

    # Pad node features; dense int8 adjacency adj[dst, src] with self loops
    # (PyG add_self_loops=True default).  Padded rows self-attend to zero
    # features -> finite, and are sliced away at the end.
    x_p = jnp.zeros((n_pad, f_in), jnp.float32).at[:n].set(x)
    src, dst = edge_index[0], edge_index[1]
    adj = jnp.zeros((n_pad, n_pad), jnp.int8).at[dst, src].set(1)
    diag = jnp.arange(n_pad)
    adj = adj.at[diag, diag].set(1)

    common = dict(tile_m=tile_m, logit_dtype=logit_dtype,
                  vmem_limit=vmem_limit)
    x1 = gat_layer(x_p, params["W1"], params["asrc1"], params["adst1"],
                   params["b1"], adj, heads=heads, f_out=hidden,
                   apply_relu=True, **common)
    # F.dropout(training=False) -> identity.
    row_ok = (jnp.arange(n_pad) < n)[:, None]
    x1 = jnp.where(row_ok, x1, 0.0)          # keep padded rows clean
    x2 = gat_layer(x1, params["W2"], params["asrc2"], params["adst2"],
                   params["b2"], adj, heads=1, f_out=classes,
                   apply_relu=False, **common)
    return x2[:n]


# ---------------------------------------------------------------------------
# Pure-JAX reference (same semantics, full f32) for validation.
# ---------------------------------------------------------------------------
def gat_layer_ref(x, W, att_src, att_dst, bias, adj, *, heads, f_out,
                  apply_relu=False):
    N = x.shape[0]
    h = x @ W
    h3 = h.reshape(N, heads, f_out)
    a_src = jnp.einsum("nhf,hf->nh", h3, att_src)
    a_dst = jnp.einsum("nhf,hf->nh", h3, att_dst)
    e = a_dst[:, None, :] + a_src[None, :, :]          # [N_dst, N_src, H]
    e = jnp.where(e > 0, e, 0.2 * e)
    mask = (adj > 0)[:, :, None]
    e = jnp.where(mask, e, -1e30)
    m = e.max(axis=1, keepdims=True)
    p = jnp.where(mask, jnp.exp(e - m), 0.0)
    attn = p / p.sum(axis=1, keepdims=True)
    out = jnp.einsum("ijh,jhf->ihf", attn, h3).reshape(N, heads * f_out) + bias
    if apply_relu:
        out = jnp.maximum(out, 0.0)
    return out


def gat_net_forward_ref(x, edge_index, params, *, hidden, classes, heads):
    n = x.shape[0]
    src, dst = edge_index[0], edge_index[1]
    adj = jnp.zeros((n, n), jnp.float32).at[dst, src].set(1.0)
    adj = adj.at[jnp.arange(n), jnp.arange(n)].set(1.0)
    x1 = gat_layer_ref(x, params["W1"], params["asrc1"], params["adst1"],
                       params["b1"], adj, heads=heads, f_out=hidden,
                       apply_relu=True)
    x2 = gat_layer_ref(x1, params["W2"], params["asrc2"], params["adst2"],
                       params["b2"], adj, heads=1, f_out=classes,
                       apply_relu=False)
    return x2


def glorot(key, shape):
    fan_in, fan_out = shape[-2], shape[-1]
    limit = (6.0 / (fan_in + fan_out)) ** 0.5
    return jax.random.uniform(key, shape, jnp.float32, -limit, limit)


if __name__ == "__main__":
    # Small, module-consistent shapes.
    N = 16            # number of graph nodes
    FEATURES = 8      # in_features of gat1
    HIDDEN = 8        # hidden per head
    HEADS = 4
    CLASSES = 3
    E = 40            # number of random directed edges

    key = jax.random.PRNGKey(0)
    keys = jax.random.split(key, 10)

    # Node features and random edge_index (2, E): row 0 = src, row 1 = dst.
    x = jax.random.normal(keys[0], (N, FEATURES), jnp.float32)
    src = jax.random.randint(keys[1], (E,), 0, N)
    dst = jax.random.randint(keys[2], (E,), 0, N)
    edge_index = jnp.stack([src, dst])

    # Deterministic parameter init (glorot weights/att, zero bias).
    params = {
        "W1": glorot(keys[3], (FEATURES, HEADS * HIDDEN)),
        "asrc1": glorot(keys[4], (HEADS, HIDDEN)),
        "adst1": glorot(keys[5], (HEADS, HIDDEN)),
        "b1": jnp.zeros((HEADS * HIDDEN,), jnp.float32),
        "W2": glorot(keys[6], (HEADS * HIDDEN, CLASSES)),
        "asrc2": glorot(keys[7], (1, CLASSES)),
        "adst2": glorot(keys[8], (1, CLASSES)),
        "b2": jnp.zeros((CLASSES,), jnp.float32),
    }

    out = gat_net_forward(x, edge_index, params, hidden=HIDDEN,
                          classes=CLASSES, heads=HEADS)
    out = jax.block_until_ready(out)

    ref = gat_net_forward_ref(x, edge_index, params, hidden=HIDDEN,
                              classes=CLASSES, heads=HEADS)
    assert out.shape == (N, CLASSES)
    # Tolerance justification: bf16 operands on both matmuls (~2^-9 relative
    # per rounding), bf16 logit chain on v6e/v7x (~0.5% on softmax weights)
    # and approx reciprocal compound to <~2-3% relative across two layers on
    # O(1)-magnitude outputs; 5e-2 rtol/atol covers this with margin while
    # still catching semantic errors (wrong mask/softmax/head wiring).
    assert jnp.allclose(out, ref, rtol=5e-2, atol=5e-2), "mismatch vs reference"

    print("KERNEL_OK")
</pallas_src>

<mosaic_0001>
module attributes {stable_mosaic.version = 11 : i64} {
  func.func @_proj_kernel(%arg0: i32, %arg1: memref<256x8xbf16, #tpu.memory_space<vmem>>, %arg2: memref<8x40xbf16, #tpu.memory_space<vmem>>, %arg3: memref<256x32xbf16, #tpu.memory_space<vmem>>, %arg4: memref<256x4xbf16, #tpu.memory_space<vmem>>, %arg5: memref<256x4xbf16, #tpu.memory_space<vmem>>) attributes {dimension_semantics = [#tpu.dimension_semantics<parallel>], iteration_bounds = array<i64: 1>, scalar_prefetch = 0 : i64, scratch_operands = 0 : i64, tpu.core_type = #tpu.core_type<tc>, window_params = [{transform_indices = @transform_0, window_bounds = array<i64: 256, 8>}, {pipeline_mode = #tpu.pipeline_mode<synchronous>, transform_indices = @transform_1, window_bounds = array<i64: 8, 40>}, {transform_indices = @transform_2, window_bounds = array<i64: 256, 32>}, {transform_indices = @transform_3, window_bounds = array<i64: 256, 4>}, {transform_indices = @transform_4, window_bounds = array<i64: 256, 4>}]} {
    %c0 = arith.constant 0 : index
    %c0_0 = arith.constant 0 : index
    %0 = vector.load %arg1[%c0, %c0_0] : memref<256x8xbf16, #tpu.memory_space<vmem>>, vector<256x8xbf16>
    %c0_1 = arith.constant 0 : index
    %c0_2 = arith.constant 0 : index
    %1 = vector.load %arg2[%c0_1, %c0_2] : memref<8x40xbf16, #tpu.memory_space<vmem>>, vector<8x40xbf16>
    %cst = arith.constant dense<0.000000e+00> : vector<256x40xf32>
    %2 = tpu.matmul %0, %1, %cst {dimension_numbers = #tpu.dot_dimension_numbers<[1], [0], [0], [1], [0, 0, 1, 1], [], []>} : vector<256x8xbf16>, vector<8x40xbf16>, vector<256x40xf32> -> vector<256x40xf32>
    %3 = vector.extract_strided_slice %2 {offsets = [0, 0], sizes = [256, 32], strides = [1, 1]} : vector<256x40xf32> to vector<256x32xf32>
    %4 = arith.truncf %3 : vector<256x32xf32> to vector<256x32xbf16>
    %c0_3 = arith.constant 0 : index
    %c0_4 = arith.constant 0 : index
    %5 = vector.load %arg3[%c0_3, %c0_4] : memref<256x32xbf16, #tpu.memory_space<vmem>>, vector<256x32xbf16>
    tpu.vector_store %arg3[%c0_3, %c0_4], %4 {strides = array<i32>} : memref<256x32xbf16, #tpu.memory_space<vmem>>, vector<256x32xbf16>,
    %6 = vector.extract_strided_slice %2 {offsets = [0, 32], sizes = [256, 4], strides = [1, 1]} : vector<256x40xf32> to vector<256x4xf32>
    %7 = arith.truncf %6 : vector<256x4xf32> to vector<256x4xbf16>
    %c0_5 = arith.constant 0 : index
    %c0_6 = arith.constant 0 : index
    %8 = vector.load %arg4[%c0_5, %c0_6] : memref<256x4xbf16, #tpu.memory_space<vmem>>, vector<256x4xbf16>
    tpu.vector_store %arg4[%c0_5, %c0_6], %7 {strides = array<i32>} : memref<256x4xbf16, #tpu.memory_space<vmem>>, vector<256x4xbf16>,
    %9 = vector.extract_strided_slice %2 {offsets = [0, 36], sizes = [256, 4], strides = [1, 1]} : vector<256x40xf32> to vector<256x4xf32>
    %10 = arith.truncf %9 : vector<256x4xf32> to vector<256x4xbf16>
    %c0_7 = arith.constant 0 : index
    %c0_8 = arith.constant 0 : index
    %11 = vector.load %arg5[%c0_7, %c0_8] : memref<256x4xbf16, #tpu.memory_space<vmem>>, vector<256x4xbf16>
    tpu.vector_store %arg5[%c0_7, %c0_8], %10 {strides = array<i32>} : memref<256x4xbf16, #tpu.memory_space<vmem>>, vector<256x4xbf16>,
    return
  }
  func.func @transform_0(%arg0: i32) -> (i32, i32) {
    %c0_i32 = arith.constant 0 : i32
    %c0_i32_0 = arith.constant 0 : i32
    return %arg0, %c0_i32 : i32, i32
  }
  func.func @transform_1(%arg0: i32) -> (i32, i32) {
    %c0_i32 = arith.constant 0 : i32
    %c0_i32_0 = arith.constant 0 : i32
    %c0_i32_1 = arith.constant 0 : i32
    return %c0_i32, %c0_i32_0 : i32, i32
  }
  func.func @transform_2(%arg0: i32) -> (i32, i32) {
    %c0_i32 = arith.constant 0 : i32
    %c0_i32_0 = arith.constant 0 : i32
    return %arg0, %c0_i32 : i32, i32
  }
  func.func @transform_3(%arg0: i32) -> (i32, i32) {
    %c0_i32 = arith.constant 0 : i32
    %c0_i32_0 = arith.constant 0 : i32
    return %arg0, %c0_i32 : i32, i32
  }
  func.func @transform_4(%arg0: i32) -> (i32, i32) {
    %c0_i32 = arith.constant 0 : i32
    %c0_i32_0 = arith.constant 0 : i32
    return %arg0, %c0_i32 : i32, i32
  }
}

</mosaic_0001>

<bundles_post_ra>
// kernel: tpu_custom_call.1
= control target key start
LH: loop header
LB: loop body
LE: loop exit
PB: predicated region body
PF: predicated region fallthrough
CT: control target
= control target key end

     0   :  { %10 = vsyncpa [#allocation3], 0  ;;  %s1543_s0 = inlined_call_operand.hbm [shape: bf16[256,8], index: 0, kind: input, shape index: {}]   ;;  %s1544_s1 = inlined_call_operand.hbm [shape: bf16[8,40], index: 1, kind: input, shape index: {}]   ;;  %s1545_s2 = inlined_call_operand.hbm [shape: bf16[256,32], index: 2, kind: output, shape index: {0}]   ;;  %s1546_s3 = inlined_call_operand.hbm [shape: bf16[256,4], index: 3, kind: output, shape index: {1}]   ;;  %s1547_s4 = inlined_call_operand.hbm [shape: bf16[256,4], index: 4, kind: output, shape index: {2}]  }
   0x1   :  { %11 = vsyncpa [#allocation6], 0 }
   0x2   :  { %12 = vsyncpa [#allocation4], 0 }
   0x3   :  { %13 = vsyncpa [#allocation9], 0  ;;  %s1131_s15 = smov [#allocation2]   ;;  %s1013_s19 = scalar_lea.hbm %s1543_s0, 2048 }
   0x4   :  { %s19_s16 = sshll.u32 %s1131_s15, 4  ;;  %p1014_p0 = scmp.ne.s32.totalorder %s1543_s0, %s1013_s19  ;;  %s20_s16 = int_to_ptr.vmem [resolvable:$true] %s19_s16 }
   0x5   :  { %p1017_p1 = scmp.lt.u32.totalorder %s1013_s19, %s1543_s0 }
   0x7   :  { %p1019_p2 = pnand %p1017_p1, %p1014_p0 }
   0x9   :  { %1022 = shalt.err (!%p1019_p2)
}
   0xa   :  { %s1023_s24 = scalar_lea.vmem %s20_s16, 2048  ;;  %p1028_p4 = scmp.lt.s32.totalorder %s20_s16, %s20_s16 }
   0xb   :  { %p1024_p3 = scmp.ne.s32.totalorder %s20_s16, %s1023_s24  ;;  %p1029_p5 = scmp.lt.s32.totalorder %s1023_s24, %s1023_s24 }
   0xd   :  { %p1030_p6 = por %p1029_p5, %p1028_p4 }
   0xf   :  { %p1031_p7 = pnand %p1030_p6, %p1024_p3 }
  0x11   :  { %1034 = shalt.err (!%p1031_p7)
}
  0x12   :  { %s1132_s25 = smov 64   ;;  %s1133_s26 = smov 4  }
  0x13   :  { %25 = dma.hbm_to_vmem [thread:$0]  %s1543_s0, 2048, %s20_s16, [#allocation3], %s1132_s25, %s1132_s25, %s1133_s26  }
  0x14   :  { %s1134_s29 = smov [#allocation5]   ;;  %s1035_s7 = scalar_lea.hbm %s1544_s1, 64 }
  0x15   :  { %s32_s30 = sshll.u32 %s1134_s29, 4  ;;  %p1036_p8 = scmp.ne.s32.totalorder %s1544_s1, %s1035_s7  ;;  %s33_s30 = int_to_ptr.vmem [resolvable:$true] %s32_s30 }
  0x16   :  { %p1039_p9 = scmp.lt.u32.totalorder %s1035_s7, %s1544_s1 }
  0x18   :  { %p1041_p10 = pnand %p1039_p9, %p1036_p8 }
  0x1a   :  { %1044 = shalt.err (!%p1041_p10)
}
  0x1b   :  { %s1045_s12 = scalar_lea.vmem %s33_s30, 64  ;;  %p1050_p12 = scmp.lt.s32.totalorder %s33_s30, %s33_s30 }
  0x1c   :  { %p1046_p11 = scmp.ne.s32.totalorder %s33_s30, %s1045_s12  ;;  %p1051_p13 = scmp.lt.s32.totalorder %s1045_s12, %s1045_s12 }
  0x1e   :  { %p1052_p0 = por %p1051_p13, %p1050_p12 }
  0x20   :  { %p1053_p1 = pnand %p1052_p0, %p1046_p11 }
  0x22   :  { %1056 = shalt.err (!%p1053_p1)
}
  0x23   :  { %35 = dma.hbm_to_vmem [thread:$0]  %s1544_s1, 64, %s33_s30, [#allocation6]  }
  0x24   :  { %1123 = dma.done.wait [#allocation3], 2048  }
  0x25   :  { %1124 = vsyncadd [#allocation3], 4294965248 }
  0x26   :  { %1125 = dma.done.wait [#allocation6], 64  }
  0x27   :  { %1126 = vsyncadd [#allocation6], 4294967232  ;;  %vm205_vm0 = vcmask 1043456   ;;  %vm156_vm1 = vcmask 64512   ;;  %v75_v0 = vld [vmem:[#allocation5] sm:$0xf] }
  0x28   :  { %986 = vmatprep.subr.msk.bf16.mxu0 %vm205_vm0, %v75_v0  ;;  %987 = vmatprep.subr.msk.bf16.mxu1 %vm205_vm0, %v75_v0  ;;  %v207_v1 = vsel %vm205_vm0, %v75_v0, 0  ;;  %v997_v2 = vld [vmem:[#allocation2] sm:$0xff]   ;;  %v999_v4 = vld [vmem:[#allocation2 + $0x8] sm:$0xff]   ;;  %v1001_v6 = vld [vmem:[#allocation2 + $0x10] sm:$0xff]   ;;  %vm498_vm2 = vcmask 257024   ;;  %s1135_s1 = smov 96  }
  0x29   :  { %951 = vmatpush3.bf16.msra.mxu0 %v207_v1  ;;  %985 = vmatpush3.bf16.msra.mxu1 %v207_v1  ;;  %v998_v3 = vld [vmem:[#allocation2 + $0x40] sm:$0xff]   ;;  %v1000_v5 = vld [vmem:[#allocation2 + $0x48] sm:$0xff]   ;;  %v1003_v7 = vld [vmem:[#allocation2 + $0x50] sm:$0xff]   ;;  %s1136_s14 = smov 92   ;;  %s1137_s15 = smov [#allocation7]   ;;  %vm627_vm3 = vcmask 27648  }
  0x2a   :  { %952 = vmatprep.mubr.msk.bf16.mxu0 %vm156_vm1, %v997_v2  ;;  %968 = vmatprep.mubr.msk.bf16.mxu1 %vm156_vm1, %v998_v3  ;;  %v1002_v8 = vld [vmem:[#allocation2 + $0x18] sm:$0xff]   ;;  %v1005_v10 = vld [vmem:[#allocation2 + $0x20] sm:$0xff]   ;;  %v1006_v12 = vld [vmem:[#allocation2 + $0x28] sm:$0xff]   ;;  %s793_s16 = sshll.u32 %s1137_s15, 4  ;;  %s794_s16 = int_to_ptr.vmem [resolvable:$true] %s793_s16 }
  0x2b   :  { %v1004_v9 = vld [vmem:[#allocation2 + $0x58] sm:$0xff]   ;;  %v1007_v11 = vld [vmem:[#allocation2 + $0x60] sm:$0xff]   ;;  %v1008_v13 = vld [vmem:[#allocation2 + $0x68] sm:$0xff]   ;;  %s1057_s17 = scalar_lea.vmem %s794_s16, 2048  ;;  %p1062_p3 = scmp.lt.s32.totalorder %s794_s16, %s794_s16 }
  0x2c   :  { %953 = vmatmul.mubr.msk.bf16.vlgmr.msra.gmra.mrb[0].mxu0 %vm156_vm1, %v999_v4  ;;  %969 = vmatmul.mubr.msk.bf16.vlgmr.msra.gmra.mrb[0].mxu1 %vm156_vm1, %v1000_v5  ;;  %v1009_v14 = vld [vmem:[#allocation2 + $0x30] sm:$0xff]   ;;  %v1010_v16 = vld [vmem:[#allocation2 + $0x38] sm:$0xff]   ;;  %p1058_p2 = scmp.ne.s32.totalorder %s794_s16, %s1057_s17  ;;  %p1063_p4 = scmp.lt.s32.totalorder %s1057_s17, %s1057_s17 }
  0x2d   :  { %956 = vmatprep.mubr.msk.bf16.mxu0 %vm156_vm1, %v1001_v6  ;;  %972 = vmatprep.mubr.msk.bf16.mxu1 %vm156_vm1, %v1003_v7  ;;  %v1011_v15 = vld [vmem:[#allocation2 + $0x70] sm:$0xff]   ;;  %v1012_v17 = vld [vmem:[#allocation2 + $0x78] sm:$0xff]  }
  0x2e   :  { %p1064_p5 = por %p1063_p4, %p1062_p3 }
  0x30   :  { %p1065_p6 = pnand %p1064_p5, %p1058_p2 }
  0x34   :  { %957 = vmatmul.mubr.msk.bf16.gmra.mrb[4].mxu0 %vm156_vm1, %v1002_v8  ;;  %973 = vmatmul.mubr.msk.bf16.gmra.mrb[4].mxu1 %vm156_vm1, %v1004_v9 }
  0x35   :  { %960 = vmatprep.mubr.msk.bf16.mxu0 %vm156_vm1, %v1005_v10  ;;  %976 = vmatprep.mubr.msk.bf16.mxu1 %vm156_vm1, %v1007_v11 }
  0x3c   :  { %961 = vmatmul.mubr.msk.bf16.gmra.mrb[8].mxu0 %vm156_vm1, %v1006_v12  ;;  %977 = vmatmul.mubr.msk.bf16.gmra.mrb[8].mxu1 %vm156_vm1, %v1008_v13 }
  0x3d   :  { %964 = vmatprep.mubr.msk.bf16.mxu0 %vm156_vm1, %v1009_v14  ;;  %980 = vmatprep.mubr.msk.bf16.mxu1 %vm156_vm1, %v1011_v15 }
  0x44   :  { %965 = vmatmul.mubr.msk.bf16.gmra.mrb[12].mxu0 %vm156_vm1, %v1010_v16  ;;  %981 = vmatmul.mubr.msk.bf16.gmra.mrb[12].mxu1 %vm156_vm1, %v1012_v17 }
  0xff   :  { %v954_v18 = vpop.f32.mrb[0].mxu0  ;;  %v970_v20 = vpop.f32.mrb[0].mxu1 }
 0x100   :  { %v903_v19 = vpack.c.bf16 %v954_v18, %v954_v18  ;;  %v243_v21 = vpop.f32.mrb[1].mxu0  ;;  %v919_v22 = vpack.c.bf16 %v970_v20, %v970_v20  ;;  %v307_v24 = vpop.f32.mrb[1].mxu1 }
 0x101   :  { %v1208_v23 = vpack.c.bf16 %v243_v21, %v243_v21  ;;  %v955_v25 = vpop.f32.mrb[2].mxu0  ;;  %v1211_v26 = vpack.c.bf16 %v307_v24, %v307_v24  ;;  %v971_v28 = vpop.f32.mrb[2].mxu1 }
 0x102   :  { %501 = vst.msk [vmem:[#allocation7 + $0x8] sm:$0xf] %vm498_vm2, %v903_v19  ;;  %v904_v27 = vpack.c.bf16 %v955_v25, %v955_v25  ;;  %535 = vrot.lane.b32.xlu1 %v903_v19, %s1135_s1  ;;  %v246_v29 = vpop.f32.mrb[3].mxu0  ;;  %517 = vst.msk [vmem:[#allocation7 + $0x48] sm:$0xf] %vm498_vm2, %v919_v22  ;;  %v920_v30 = vpack.c.bf16 %v971_v28, %v971_v28  ;;  %567 = vrot.lane.b32.xlu0 %v919_v22, %s1135_s1  ;;  %v310_v31 = vpop.f32.mrb[3].mxu1 }
 0x103   :  { %499 = vst.msk [vmem:[#allocation7] sm:$0xf] %vm498_vm2, %v1208_v23  ;;  %v1218_v32 = vpack.c.bf16 %v246_v29, %v246_v29  ;;  %515 = vst.msk [vmem:[#allocation7 + $0x40] sm:$0xf] %vm498_vm2, %v1211_v26  ;;  %v1223_v33 = vpack.c.bf16 %v310_v31, %v310_v31 }
 0x104   :  { %502 = vst.msk [vmem:[#allocation7 + $0xc] sm:$0xf] %vm498_vm2, %v904_v27  ;;  %518 = vst.msk [vmem:[#allocation7 + $0x4c] sm:$0xf] %vm498_vm2, %v920_v30 }
 0x105   :  { %500 = vst.msk [vmem:[#allocation7 + $0x4] sm:$0xf] %vm498_vm2, %v1218_v32  ;;  %516 = vst.msk [vmem:[#allocation7 + $0x44] sm:$0xf] %vm498_vm2, %v1223_v33 }
 0x106   :  { %537 = vrot.lane.b32.xlu1 %v904_v27, %s1135_s1  ;;  %664 = vrot.lane.b32.xlu0 %v903_v19, %s1136_s14 }
 0x107   :  { %v958_v34 = vpop.f32.mrb[4].mxu0  ;;  %v974_v37 = vpop.f32.mrb[4].mxu1 }
 0x108   :  { %v1232_v35 = vpack.c.bf16 %v958_v34, %v958_v34  ;;  %v259_v36 = vpop.f32.mrb[5].mxu0  ;;  %v1236_v40 = vpack.c.bf16 %v974_v37, %v974_v37  ;;  %v323_v41 = vpop.f32.mrb[5].mxu1 }
 0x109   :  { %v1234_v38 = vpack.c.bf16 %v259_v36, %v259_v36  ;;  %v959_v39 = vpop.f32.mrb[6].mxu0  ;;  %v1243_v44 = vpack.c.bf16 %v323_v41, %v323_v41  ;;  %v975_v45 = vpop.f32.mrb[6].mxu1 }
 0x10a   :  { %569 = vrot.lane.b32.xlu1 %v920_v30, %s1135_s1  ;;  %505 = vst.msk [vmem:[#allocation7 + $0x18] sm:$0xf] %vm498_vm2, %v1232_v35  ;;  %v1241_v42 = vpack.c.bf16 %v959_v39, %v959_v39  ;;  %v262_v43 = vpop.f32.mrb[7].mxu0  ;;  %696 = vrot.lane.b32.xlu0 %v919_v22, %s1136_s14  ;;  %521 = vst.msk [vmem:[#allocation7 + $0x58] sm:$0xf] %vm498_vm2, %v1236_v40  ;;  %v1252_v47 = vpack.c.bf16 %v975_v45, %v975_v45  ;;  %v326_v48 = vpop.f32.mrb[7].mxu1 }
 0x10b   :  { %503 = vst.msk [vmem:[#allocation7 + $0x10] sm:$0xf] %vm498_vm2, %v1234_v38  ;;  %v1248_v46 = vpack.c.bf16 %v262_v43, %v262_v43  ;;  %519 = vst.msk [vmem:[#allocation7 + $0x50] sm:$0xf] %vm498_vm2, %v1243_v44  ;;  %v1258_v49 = vpack.c.bf16 %v326_v48, %v326_v48 }
 0x10c   :  { %506 = vst.msk [vmem:[#allocation7 + $0x1c] sm:$0xf] %vm498_vm2, %v1241_v42  ;;  %522 = vst.msk [vmem:[#allocation7 + $0x5c] sm:$0xf] %vm498_vm2, %v1252_v47 }
 0x10d   :  { %504 = vst.msk [vmem:[#allocation7 + $0x14] sm:$0xf] %vm498_vm2, %v1248_v46  ;;  %520 = vst.msk [vmem:[#allocation7 + $0x54] sm:$0xf] %vm498_vm2, %v1258_v49 }
 0x10e   :  { %666 = vrot.lane.b32.xlu1 %v904_v27, %s1136_s14  ;;  %531 = vrot.lane.b32.xlu0 %v1208_v23, %s1135_s1 }
 0x10f   :  { %v962_v50 = vpop.f32.mrb[8].mxu0  ;;  %v978_v53 = vpop.f32.mrb[8].mxu1 }
 0x110   :  { %v1269_v51 = vpack.c.bf16 %v962_v50, %v962_v50  ;;  %v275_v52 = vpop.f32.mrb[9].mxu0  ;;  %v1273_v56 = vpack.c.bf16 %v978_v53, %v978_v53  ;;  %v339_v57 = vpop.f32.mrb[9].mxu1 }
 0x111   :  { %v1271_v54 = vpack.c.bf16 %v275_v52, %v275_v52  ;;  %v963_v55 = vpop.f32.mrb[10].mxu0  ;;  %v1280_v60 = vpack.c.bf16 %v339_v57, %v339_v57  ;;  %v979_v61 = vpop.f32.mrb[10].mxu1 }
 0x112   :  { %698 = vrot.lane.b32.xlu1 %v920_v30, %s1136_s14  ;;  %509 = vst.msk [vmem:[#allocation7 + $0x28] sm:$0xf] %vm498_vm2, %v1269_v51  ;;  %v1278_v58 = vpack.c.bf16 %v963_v55, %v963_v55  ;;  %v278_v59 = vpop.f32.mrb[11].mxu0  ;;  %563 = vrot.lane.b32.xlu0 %v1211_v26, %s1135_s1  ;;  %525 = vst.msk [vmem:[#allocation7 + $0x68] sm:$0xf] %vm498_vm2, %v1273_v56  ;;  %v928_v63 = vpack.c.bf16 %v979_v61, %v979_v61  ;;  %v342_v0 = vpop.f32.mrb[11].mxu1 }
 0x113   :  { %507 = vst.msk [vmem:[#allocation7 + $0x20] sm:$0xf] %vm498_vm2, %v1271_v54  ;;  %v1286_v62 = vpack.c.bf16 %v278_v59, %v278_v59  ;;  %523 = vst.msk [vmem:[#allocation7 + $0x60] sm:$0xf] %vm498_vm2, %v1280_v60  ;;  %v1294_v1 = vpack.c.bf16 %v342_v0, %v342_v0 }
 0x114   :  { %510 = vst.msk [vmem:[#allocation7 + $0x2c] sm:$0xf] %vm498_vm2, %v1278_v58  ;;  %526 = vst.msk [vmem:[#allocation7 + $0x6c] sm:$0xf] %vm498_vm2, %v928_v63 }
 0x115   :  { %508 = vst.msk [vmem:[#allocation7 + $0x24] sm:$0xf] %vm498_vm2, %v1286_v62  ;;  %524 = vst.msk [vmem:[#allocation7 + $0x64] sm:$0xf] %vm498_vm2, %v1294_v1 }
 0x116   :  { %565 = vrot.lane.b32.xlu1 %v1223_v33, %s1135_s1  ;;  %660 = vrot.lane.b32.xlu0 %v1208_v23, %s1136_s14 }
 0x117   :  { %v966_v2 = vpop.f32.mrb[12].mxu0  ;;  %v982_v5 = vpop.f32.mrb[12].mxu1 }
 0x118   :  { %v1305_v3 = vpack.c.bf16 %v966_v2, %v966_v2  ;;  %v291_v4 = vpop.f32.mrb[13].mxu0  ;;  %v1309_v8 = vpack.c.bf16 %v982_v5, %v982_v5  ;;  %v355_v9 = vpop.f32.mrb[13].mxu1 }
 0x119   :  { %v1307_v6 = vpack.c.bf16 %v291_v4, %v291_v4  ;;  %v967_v7 = vpop.f32.mrb[14].mxu0  ;;  %v1315_v12 = vpack.c.bf16 %v355_v9, %v355_v9  ;;  %v983_v13 = vpop.f32.mrb[14].mxu1 }
 0x11a   :  { %662 = vrot.lane.b32.xlu1 %v1218_v32, %s1136_s14  ;;  %513 = vst.msk [vmem:[#allocation7 + $0x38] sm:$0xf] %vm498_vm2, %v1305_v3  ;;  %v916_v10 = vpack.c.bf16 %v967_v7, %v967_v7  ;;  %v294_v11 = vpop.f32.mrb[15].mxu0  ;;  %692 = vrot.lane.b32.xlu0 %v1211_v26, %s1136_s14  ;;  %529 = vst.msk [vmem:[#allocation7 + $0x78] sm:$0xf] %vm498_vm2, %v1309_v8  ;;  %v1325_v15 = vpack.c.bf16 %v983_v13, %v983_v13  ;;  %v358_v16 = vpop.f32.mrb[15].mxu1 }
 0x11b   :  { %511 = vst.msk [vmem:[#allocation7 + $0x30] sm:$0xf] %vm498_vm2, %v1307_v6  ;;  %v1321_v14 = vpack.c.bf16 %v294_v11, %v294_v11  ;;  %527 = vst.msk [vmem:[#allocation7 + $0x70] sm:$0xf] %vm498_vm2, %v1315_v12  ;;  %v1330_v17 = vpack.c.bf16 %v358_v16, %v358_v16 }
 0x11c   :  { %514 = vst.msk [vmem:[#allocation7 + $0x3c] sm:$0xf] %vm498_vm2, %v916_v10  ;;  %530 = vst.msk [vmem:[#allocation7 + $0x7c] sm:$0xf] %vm498_vm2, %v1325_v15 }
 0x11d   :  { %512 = vst.msk [vmem:[#allocation7 + $0x34] sm:$0xf] %vm498_vm2, %v1321_v14  ;;  %528 = vst.msk [vmem:[#allocation7 + $0x74] sm:$0xf] %vm498_vm2, %v1330_v17 }
 0x11e   :  { %694 = vrot.lane.b32.xlu1 %v1223_v33, %s1136_s14  ;;  %533 = vrot.lane.b32.xlu0 %v1218_v32, %s1135_s1 }
 0x122   :  { %545 = vrot.lane.b32.xlu1 %v1241_v42, %s1135_s1  ;;  %543 = vrot.lane.b32.xlu0 %v1232_v35, %s1135_s1 }
 0x126   :  { %577 = vrot.lane.b32.xlu1 %v1252_v47, %s1135_s1  ;;  %575 = vrot.lane.b32.xlu0 %v1236_v40, %s1135_s1 }
 0x12a   :  { %674 = vrot.lane.b32.xlu1 %v1241_v42, %s1136_s14  ;;  %672 = vrot.lane.b32.xlu0 %v1232_v35, %s1136_s14 }
 0x12e   :  { %706 = vrot.lane.b32.xlu1 %v1252_v47, %s1136_s14  ;;  %704 = vrot.lane.b32.xlu0 %v1236_v40, %s1136_s14 }
 0x132   :  { %541 = vrot.lane.b32.xlu1 %v1248_v46, %s1135_s1  ;;  %539 = vrot.lane.b32.xlu0 %v1234_v38, %s1135_s1 }
 0x136   :  { %573 = vrot.lane.b32.xlu1 %v1258_v49, %s1135_s1  ;;  %571 = vrot.lane.b32.xlu0 %v1243_v44, %s1135_s1 }
 0x13a   :  { %670 = vrot.lane.b32.xlu1 %v1248_v46, %s1136_s14  ;;  %668 = vrot.lane.b32.xlu0 %v1234_v38, %s1136_s14 }
 0x13e   :  { %702 = vrot.lane.b32.xlu1 %v1258_v49, %s1136_s14  ;;  %700 = vrot.lane.b32.xlu0 %v1243_v44, %s1136_s14 }
 0x142   :  { %553 = vrot.lane.b32.xlu1 %v1278_v58, %s1135_s1  ;;  %551 = vrot.lane.b32.xlu0 %v1269_v51, %s1135_s1 }
 0x146   :  { %585 = vrot.lane.b32.xlu1 %v928_v63, %s1135_s1  ;;  %583 = vrot.lane.b32.xlu0 %v1273_v56, %s1135_s1 }
 0x14a   :  { %682 = vrot.lane.b32.xlu1 %v1278_v58, %s1136_s14  ;;  %680 = vrot.lane.b32.xlu0 %v1269_v51, %s1136_s14 }
 0x14e   :  { %714 = vrot.lane.b32.xlu1 %v928_v63, %s1136_s14  ;;  %712 = vrot.lane.b32.xlu0 %v1273_v56, %s1136_s14 }
 0x152   :  { %549 = vrot.lane.b32.xlu1 %v1286_v62, %s1135_s1  ;;  %547 = vrot.lane.b32.xlu0 %v1271_v54, %s1135_s1 }
 0x156   :  { %581 = vrot.lane.b32.xlu1 %v1294_v1, %s1135_s1  ;;  %579 = vrot.lane.b32.xlu0 %v1280_v60, %s1135_s1 }
 0x15a   :  { %678 = vrot.lane.b32.xlu1 %v1286_v62, %s1136_s14  ;;  %676 = vrot.lane.b32.xlu0 %v1271_v54, %s1136_s14 }
 0x15e   :  { %710 = vrot.lane.b32.xlu1 %v1294_v1, %s1136_s14  ;;  %708 = vrot.lane.b32.xlu0 %v1280_v60, %s1136_s14 }
 0x162   :  { %561 = vrot.lane.b32.xlu1 %v916_v10, %s1135_s1  ;;  %559 = vrot.lane.b32.xlu0 %v1305_v3, %s1135_s1 }
 0x166   :  { %593 = vrot.lane.b32.xlu1 %v1325_v15, %s1135_s1  ;;  %591 = vrot.lane.b32.xlu0 %v1309_v8, %s1135_s1 }
 0x16a   :  { %690 = vrot.lane.b32.xlu1 %v916_v10, %s1136_s14  ;;  %688 = vrot.lane.b32.xlu0 %v1305_v3, %s1136_s14 }
 0x16e   :  { %557 = vrot.lane.b32.xlu1 %v1321_v14, %s1135_s1  ;;  %555 = vrot.lane.b32.xlu0 %v1307_v6, %s1135_s1 }
 0x172   :  { %589 = vrot.lane.b32.xlu1 %v1330_v17, %s1135_s1  ;;  %587 = vrot.lane.b32.xlu0 %v1315_v12, %s1135_s1 }
 0x174   :  { %v536_v18 = vpop.permute.xlu1 %535 }
 0x175   :  { %1068 = shalt.err (!%p1065_p6)
}
 0x176   :  { %s1069_s20 = scalar_lea.hbm %s1545_s2, 2048 }
 0x177   :  { %p1070_p7 = scmp.ne.s32.totalorder %s1545_s2, %s1069_s20  ;;  %p1073_p8 = scmp.lt.u32.totalorder %s1069_s20, %s1545_s2 }
 0x179   :  { %p1075_p9 = pnand %p1073_p8, %p1070_p7 }
 0x17b   :  { %1078 = shalt.err (!%p1075_p9)
}
 0x17c   :  { %799 = dma.vmem_to_hbm [thread:$0]  %s794_s16, 2048, %s1545_s2, [#allocation4], %s1132_s25, %s1132_s25, %s1133_s26   ;;  %v568_v19 = vpop.permute.xlu0 %567  ;;  %630 = vst.msk [vmem:[#allocation8 + $0x8] sm:$0xf] %vm627_vm3, %v536_v18  ;;  %v538_v20 = vpop.permute.xlu1 %537 }
 0x17d   :  { %646 = vst.msk [vmem:[#allocation8 + $0x48] sm:$0xf] %vm627_vm3, %v568_v19  ;;  %686 = vrot.lane.b32.xlu1 %v1321_v14, %s1136_s14  ;;  %684 = vrot.lane.b32.xlu0 %v1307_v6, %s1136_s14  ;;  %631 = vst.msk [vmem:[#allocation8 + $0xc] sm:$0xf] %vm627_vm3, %v538_v20  ;;  %s1138_s2 = smov [#allocation8]  }
 0x17e   :  { %s805_s29 = sshll.u32 %s1138_s2, 4  ;;  %s806_s29 = int_to_ptr.vmem [resolvable:$true] %s805_s29 }
 0x17f   :  { %s1079_s30 = scalar_lea.vmem %s806_s29, 2048  ;;  %p1084_p11 = scmp.lt.s32.totalorder %s806_s29, %s806_s29 }
 0x180   :  { %v665_v21 = vpop.permute.xlu0 %664  ;;  %v570_v22 = vpop.permute.xlu1 %569  ;;  %p1080_p10 = scmp.ne.s32.totalorder %s806_s29, %s1079_s30  ;;  %p1085_p12 = scmp.lt.s32.totalorder %s1079_s30, %s1079_s30 }
 0x181   :  { %758 = vst.msk [vmem:[#allocation10 + $0x8] sm:$0xf] %vm627_vm3, %v665_v21  ;;  %718 = vrot.lane.b32.xlu1 %v1330_v17, %s1136_s14  ;;  %716 = vrot.lane.b32.xlu0 %v1315_v12, %s1136_s14  ;;  %647 = vst.msk [vmem:[#allocation8 + $0x4c] sm:$0xf] %vm627_vm3, %v570_v22 }
 0x182   :  { %p1086_p13 = por %p1085_p12, %p1084_p11 }
 0x184   :  { %v697_v23 = vpop.permute.xlu0 %696  ;;  %v667_v24 = vpop.permute.xlu1 %666  ;;  %p1087_p0 = pnand %p1086_p13, %p1080_p10 }
 0x185   :  { %774 = vst.msk [vmem:[#allocation10 + $0x48] sm:$0xf] %vm627_vm3, %v697_v23  ;;  %722 = vrot.lane.b32.xlu1 %v1325_v15, %s1136_s14  ;;  %720 = vrot.lane.b32.xlu0 %v1309_v8, %s1136_s14  ;;  %759 = vst.msk [vmem:[#allocation10 + $0xc] sm:$0xf] %vm627_vm3, %v667_v24 }
 0x188   :  { %v532_v25 = vpop.permute.xlu0 %531  ;;  %v699_v26 = vpop.permute.xlu1 %698 }
 0x189   :  { %628 = vst.msk [vmem:[#allocation8] sm:$0xf] %vm627_vm3, %v532_v25  ;;  %775 = vst.msk [vmem:[#allocation10 + $0x4c] sm:$0xf] %vm627_vm3, %v699_v26 }
 0x18c   :  { %v564_v27 = vpop.permute.xlu0 %563  ;;  %v566_v28 = vpop.permute.xlu1 %565 }
 0x18d   :  { %644 = vst.msk [vmem:[#allocation8 + $0x40] sm:$0xf] %vm627_vm3, %v564_v27  ;;  %645 = vst.msk [vmem:[#allocation8 + $0x44] sm:$0xf] %vm627_vm3, %v566_v28 }
 0x190   :  { %v661_v29 = vpop.permute.xlu0 %660  ;;  %v663_v30 = vpop.permute.xlu1 %662 }
 0x191   :  { %756 = vst.msk [vmem:[#allocation10] sm:$0xf] %vm627_vm3, %v661_v29  ;;  %757 = vst.msk [vmem:[#allocation10 + $0x4] sm:$0xf] %vm627_vm3, %v663_v30 }
 0x194   :  { %v693_v31 = vpop.permute.xlu0 %692  ;;  %v695_v32 = vpop.permute.xlu1 %694 }
 0x195   :  { %772 = vst.msk [vmem:[#allocation10 + $0x40] sm:$0xf] %vm627_vm3, %v693_v31  ;;  %773 = vst.msk [vmem:[#allocation10 + $0x44] sm:$0xf] %vm627_vm3, %v695_v32 }
 0x198   :  { %v534_v33 = vpop.permute.xlu0 %533  ;;  %v546_v34 = vpop.permute.xlu1 %545 }
 0x199   :  { %629 = vst.msk [vmem:[#allocation8 + $0x4] sm:$0xf] %vm627_vm3, %v534_v33  ;;  %635 = vst.msk [vmem:[#allocation8 + $0x1c] sm:$0xf] %vm627_vm3, %v546_v34 }
 0x19c   :  { %v544_v35 = vpop.permute.xlu0 %543  ;;  %v578_v36 = vpop.permute.xlu1 %577 }
 0x19d   :  { %634 = vst.msk [vmem:[#allocation8 + $0x18] sm:$0xf] %vm627_vm3, %v544_v35  ;;  %651 = vst.msk [vmem:[#allocation8 + $0x5c] sm:$0xf] %vm627_vm3, %v578_v36 }
 0x1a0   :  { %v576_v37 = vpop.permute.xlu0 %575  ;;  %v675_v38 = vpop.permute.xlu1 %674 }
 0x1a1   :  { %650 = vst.msk [vmem:[#allocation8 + $0x58] sm:$0xf] %vm627_vm3, %v576_v37  ;;  %763 = vst.msk [vmem:[#allocation10 + $0x1c] sm:$0xf] %vm627_vm3, %v675_v38 }
 0x1a4   :  { %v673_v39 = vpop.permute.xlu0 %672  ;;  %v707_v40 = vpop.permute.xlu1 %706 }
 0x1a5   :  { %762 = vst.msk [vmem:[#allocation10 + $0x18] sm:$0xf] %vm627_vm3, %v673_v39  ;;  %779 = vst.msk [vmem:[#allocation10 + $0x5c] sm:$0xf] %vm627_vm3, %v707_v40 }
 0x1a8   :  { %v705_v41 = vpop.permute.xlu0 %704  ;;  %v542_v42 = vpop.permute.xlu1 %541 }
 0x1a9   :  { %778 = vst.msk [vmem:[#allocation10 + $0x58] sm:$0xf] %vm627_vm3, %v705_v41  ;;  %633 = vst.msk [vmem:[#allocation8 + $0x14] sm:$0xf] %vm627_vm3, %v542_v42 }
 0x1ac   :  { %v540_v43 = vpop.permute.xlu0 %539  ;;  %v574_v44 = vpop.permute.xlu1 %573 }
 0x1ad   :  { %632 = vst.msk [vmem:[#allocation8 + $0x10] sm:$0xf] %vm627_vm3, %v540_v43  ;;  %649 = vst.msk [vmem:[#allocation8 + $0x54] sm:$0xf] %vm627_vm3, %v574_v44 }
 0x1b0   :  { %v572_v45 = vpop.permute.xlu0 %571  ;;  %v671_v46 = vpop.permute.xlu1 %670 }
 0x1b1   :  { %648 = vst.msk [vmem:[#allocation8 + $0x50] sm:$0xf] %vm627_vm3, %v572_v45  ;;  %761 = vst.msk [vmem:[#allocation10 + $0x14] sm:$0xf] %vm627_vm3, %v671_v46 }
 0x1b4   :  { %v669_v47 = vpop.permute.xlu0 %668  ;;  %v703_v48 = vpop.permute.xlu1 %702 }
 0x1b5   :  { %760 = vst.msk [vmem:[#allocation10 + $0x10] sm:$0xf] %vm627_vm3, %v669_v47  ;;  %777 = vst.msk [vmem:[#allocation10 + $0x54] sm:$0xf] %vm627_vm3, %v703_v48 }
 0x1b8   :  { %v701_v49 = vpop.permute.xlu0 %700  ;;  %v554_v50 = vpop.permute.xlu1 %553 }
 0x1b9   :  { %776 = vst.msk [vmem:[#allocation10 + $0x50] sm:$0xf] %vm627_vm3, %v701_v49  ;;  %639 = vst.msk [vmem:[#allocation8 + $0x2c] sm:$0xf] %vm627_vm3, %v554_v50 }
 0x1bc   :  { %v552_v51 = vpop.permute.xlu0 %551  ;;  %v586_v52 = vpop.permute.xlu1 %585 }
 0x1bd   :  { %638 = vst.msk [vmem:[#allocation8 + $0x28] sm:$0xf] %vm627_vm3, %v552_v51  ;;  %655 = vst.msk [vmem:[#allocation8 + $0x6c] sm:$0xf] %vm627_vm3, %v586_v52 }
 0x1c0   :  { %v584_v53 = vpop.permute.xlu0 %583  ;;  %v683_v54 = vpop.permute.xlu1 %682 }
 0x1c1   :  { %654 = vst.msk [vmem:[#allocation8 + $0x68] sm:$0xf] %vm627_vm3, %v584_v53  ;;  %767 = vst.msk [vmem:[#allocation10 + $0x2c] sm:$0xf] %vm627_vm3, %v683_v54 }
 0x1c4   :  { %v681_v55 = vpop.permute.xlu0 %680  ;;  %v715_v56 = vpop.permute.xlu1 %714 }
 0x1c5   :  { %766 = vst.msk [vmem:[#allocation10 + $0x28] sm:$0xf] %vm627_vm3, %v681_v55  ;;  %783 = vst.msk [vmem:[#allocation10 + $0x6c] sm:$0xf] %vm627_vm3, %v715_v56 }
 0x1c8   :  { %v713_v57 = vpop.permute.xlu0 %712  ;;  %v550_v58 = vpop.permute.xlu1 %549 }
 0x1c9   :  { %782 = vst.msk [vmem:[#allocation10 + $0x68] sm:$0xf] %vm627_vm3, %v713_v57  ;;  %637 = vst.msk [vmem:[#allocation8 + $0x24] sm:$0xf] %vm627_vm3, %v550_v58 }
 0x1cc   :  { %v548_v59 = vpop.permute.xlu0 %547  ;;  %v582_v60 = vpop.permute.xlu1 %581 }
 0x1cd   :  { %636 = vst.msk [vmem:[#allocation8 + $0x20] sm:$0xf] %vm627_vm3, %v548_v59  ;;  %653 = vst.msk [vmem:[#allocation8 + $0x64] sm:$0xf] %vm627_vm3, %v582_v60 }
 0x1d0   :  { %v580_v61 = vpop.permute.xlu0 %579  ;;  %v679_v62 = vpop.permute.xlu1 %678 }
 0x1d1   :  { %652 = vst.msk [vmem:[#allocation8 + $0x60] sm:$0xf] %vm627_vm3, %v580_v61  ;;  %765 = vst.msk [vmem:[#allocation10 + $0x24] sm:$0xf] %vm627_vm3, %v679_v62 }
 0x1d4   :  { %v677_v63 = vpop.permute.xlu0 %676  ;;  %v711_v0 = vpop.permute.xlu1 %710 }
 0x1d5   :  { %764 = vst.msk [vmem:[#allocation10 + $0x20] sm:$0xf] %vm627_vm3, %v677_v63  ;;  %781 = vst.msk [vmem:[#allocation10 + $0x64] sm:$0xf] %vm627_vm3, %v711_v0 }
 0x1d8   :  { %v709_v1 = vpop.permute.xlu0 %708  ;;  %v562_v2 = vpop.permute.xlu1 %561 }
 0x1d9   :  { %780 = vst.msk [vmem:[#allocation10 + $0x60] sm:$0xf] %vm627_vm3, %v709_v1  ;;  %643 = vst.msk [vmem:[#allocation8 + $0x3c] sm:$0xf] %vm627_vm3, %v562_v2 }
 0x1dc   :  { %v560_v3 = vpop.permute.xlu0 %559  ;;  %v594_v4 = vpop.permute.xlu1 %593 }
 0x1dd   :  { %642 = vst.msk [vmem:[#allocation8 + $0x38] sm:$0xf] %vm627_vm3, %v560_v3  ;;  %659 = vst.msk [vmem:[#allocation8 + $0x7c] sm:$0xf] %vm627_vm3, %v594_v4 }
 0x1e0   :  { %v592_v5 = vpop.permute.xlu0 %591  ;;  %v691_v6 = vpop.permute.xlu1 %690 }
 0x1e1   :  { %658 = vst.msk [vmem:[#allocation8 + $0x78] sm:$0xf] %vm627_vm3, %v592_v5  ;;  %771 = vst.msk [vmem:[#allocation10 + $0x3c] sm:$0xf] %vm627_vm3, %v691_v6 }
 0x1e4   :  { %v689_v7 = vpop.permute.xlu0 %688  ;;  %v558_v8 = vpop.permute.xlu1 %557 }
 0x1e5   :  { %770 = vst.msk [vmem:[#allocation10 + $0x38] sm:$0xf] %vm627_vm3, %v689_v7  ;;  %641 = vst.msk [vmem:[#allocation8 + $0x34] sm:$0xf] %vm627_vm3, %v558_v8 }
 0x1e8   :  { %v556_v9 = vpop.permute.xlu0 %555  ;;  %v590_v10 = vpop.permute.xlu1 %589 }
 0x1e9   :  { %640 = vst.msk [vmem:[#allocation8 + $0x30] sm:$0xf] %vm627_vm3, %v556_v9  ;;  %657 = vst.msk [vmem:[#allocation8 + $0x74] sm:$0xf] %vm627_vm3, %v590_v10 }
 0x1ec   :  { %v588_v11 = vpop.permute.xlu0 %587 }
 0x1ed   :  { %656 = vst.msk [vmem:[#allocation8 + $0x70] sm:$0xf] %vm627_vm3, %v588_v11 }
 0x1ee   :  { %1090 = shalt.err (!%p1087_p0)
}
 0x1ef   :  { %s1091_s7 = scalar_lea.hbm %s1546_s3, 2048 }
 0x1f0   :  { %p1092_p1 = scmp.ne.s32.totalorder %s1546_s3, %s1091_s7  ;;  %p1095_p2 = scmp.lt.u32.totalorder %s1091_s7, %s1546_s3 }
 0x1f2   :  { %p1097_p3 = pnand %p1095_p2, %p1092_p1 }
 0x1f4   :  { %1100 = shalt.err (!%p1097_p3)
}
 0x1f5   :  { %811 = dma.vmem_to_hbm [thread:$0]  %s806_s29, 2048, %s1546_s3, [#allocation9], %s1132_s25, %s1132_s25, %s1133_s26   ;;  %v687_v12 = vpop.permute.xlu1 %686  ;;  %v685_v13 = vpop.permute.xlu0 %684 }
 0x1f6   :  { %769 = vst.msk [vmem:[#allocation10 + $0x34] sm:$0xf] %vm627_vm3, %v687_v12  ;;  %768 = vst.msk [vmem:[#allocation10 + $0x30] sm:$0xf] %vm627_vm3, %v685_v13  ;;  %s1139_s13 = smov [#allocation10]  }
 0x1f7   :  { %s817_s1 = sshll.u32 %s1139_s13, 4  ;;  %s818_s1 = int_to_ptr.vmem [resolvable:$true] %s817_s1 }
 0x1f8   :  { %s1101_s3 = scalar_lea.vmem %s818_s1, 2048  ;;  %p1106_p5 = scmp.lt.s32.totalorder %s818_s1, %s818_s1 }
 0x1f9   :  { %v719_v14 = vpop.permute.xlu1 %718  ;;  %v717_v15 = vpop.permute.xlu0 %716  ;;  %p1102_p4 = scmp.ne.s32.totalorder %s818_s1, %s1101_s3  ;;  %p1107_p6 = scmp.lt.s32.totalorder %s1101_s3, %s1101_s3 }
 0x1fa   :  { %785 = vst.msk [vmem:[#allocation10 + $0x74] sm:$0xf] %vm627_vm3, %v719_v14  ;;  %784 = vst.msk [vmem:[#allocation10 + $0x70] sm:$0xf] %vm627_vm3, %v717_v15 }
 0x1fb   :  { %p1108_p7 = por %p1107_p6, %p1106_p5 }
 0x1fd   :  { %v723_v16 = vpop.permute.xlu1 %722  ;;  %v721_v17 = vpop.permute.xlu0 %720  ;;  %p1109_p8 = pnand %p1108_p7, %p1102_p4 }
 0x1fe   :  { %787 = vst.msk [vmem:[#allocation10 + $0x7c] sm:$0xf] %vm627_vm3, %v723_v16  ;;  %786 = vst.msk [vmem:[#allocation10 + $0x78] sm:$0xf] %vm627_vm3, %v721_v17 }
 0x1ff   :  { %1112 = shalt.err (!%p1109_p8)
}
 0x200   :  { %s1113_s16 = scalar_lea.hbm %s1547_s4, 2048 }
 0x201   :  { %p1114_p9 = scmp.ne.s32.totalorder %s1547_s4, %s1113_s16  ;;  %p1117_p10 = scmp.lt.u32.totalorder %s1113_s16, %s1547_s4 }
 0x203   :  { %p1119_p11 = pnand %p1117_p10, %p1114_p9 }
 0x205   :  { %1122 = shalt.err (!%p1119_p11)
}
 0x206   :  { %823 = dma.vmem_to_hbm [thread:$0]  %s818_s1, 2048, %s1547_s4, [#allocation9], %s1132_s25, %s1132_s25, %s1133_s26  }
 0x207   :  { %1127 = dma.done.wait [#allocation4], 2048  }
 0x208   :  { %1128 = vsyncadd [#allocation4], 4294965248 }
 0x209   :  { %1129 = dma.done.wait [#allocation9], 4096  }
 0x20a   :  { %1130 = vsyncadd [#allocation9], 4294963200 }
 0x20b   :  { %833 = vsyncpa [#allocation3], 1 }
 0x20c   :  { %834 = vsyncpa [#allocation6], 1 }
 0x20d   :  { %835 = vsyncpa [#allocation4], 1 }
 0x20e   :  { %836 = vsyncpa [#allocation9], 1 }

</bundles_post_ra>
